<compile_context>
chip_gen: v7x
topology: tpu7x:2x2x1
jax: 0.10.0
libtpu: 0.0.40
codegen_flags: <defaults>
</compile_context>

<pallas_src>
import functools
import inspect

import jax
import jax.numpy as jnp
from jax.experimental import pallas as pl
from jax.experimental.pallas import tpu as pltpu


def _round_up(x, m):
    return ((x + m - 1) // m) * m


def _gelu_exact(x):
    # PyTorch nn.GELU() default = exact erf-based GELU (computed in x.dtype).
    inv_sqrt2 = jnp.asarray(0.7071067811865476, dtype=x.dtype)
    half = jnp.asarray(0.5, dtype=x.dtype)
    one = jnp.asarray(1.0, dtype=x.dtype)
    return half * x * (one + jax.lax.erf(x * inv_sqrt2))


@functools.lru_cache(maxsize=1)
def _tpu_info():
    """(vmem_capacity_bytes, has_bf16_elementwise, num_tensorcores_per_chip)."""
    try:
        kind = getattr(jax.devices()[0], "device_kind", "").lower()
    except Exception:
        kind = ""
    num_cores = 2 if "v7" in kind else 1
    has_bf16_vpu = "v5" not in kind            # v5e has no bf16 VALU/EUP
    vmem_cap = (64 << 20) if "v7" in kind else (128 << 20)
    try:
        info = pltpu.get_tpu_info()
        vmem_cap = int(info.vmem_capacity_bytes)
    except Exception:
        pass
    return vmem_cap, has_bf16_vpu, num_cores


@functools.lru_cache(maxsize=1)
def _supports_buffered_specs():
    if not hasattr(pl, "Buffered"):
        return False
    try:
        return "pipeline_mode" in inspect.signature(pl.BlockSpec).parameters
    except (ValueError, TypeError):
        return True


def mlp_kernel(x_ref, w1_ref, b1_ref, w2_ref, b2_ref, w3_ref, b3_ref, o_ref,
               *, n_chunks, act_dtype):
    """x tile [TM, in_p] bf16; weights [in, out] bf16 (resident); biases [1, out] f32.

    The TM rows are processed as `n_chunks` independent sub-chains so the LLO
    scheduler can overlap chunk i's VPU/EUP GELU with chunk i+1's MXU matmuls.
    """
    tm = x_ref.shape[0]
    cs = tm // n_chunks
    for c in range(n_chunks):
        lo = c * cs
        x = x_ref[lo:lo + cs, :]

        h1 = jnp.dot(x, w1_ref[...], preferred_element_type=jnp.float32)
        h1 = _gelu_exact((h1 + b1_ref[...]).astype(act_dtype))

        h2 = jnp.dot(h1.astype(w2_ref.dtype), w2_ref[...],
                     preferred_element_type=jnp.float32)
        h2 = _gelu_exact((h2 + b2_ref[...]).astype(act_dtype))

        h3 = jnp.dot(h2.astype(w3_ref.dtype), w3_ref[...],
                     preferred_element_type=jnp.float32)
        h3 = h3 + b3_ref[...]

        o_ref[lo:lo + cs, :] = h3.astype(o_ref.dtype)


def prepare_mlp_params(w1, b1, w2, b2, w3, b3, matmul_dtype=jnp.bfloat16):
    """One-time prep (outside jit): transpose to [in, out], zero-pad feature dims to
    multiples of 128 (lane axis), cast weights to bf16 for the MXU; biases stay f32.
    Zero-padded bias columns keep GELU(0)=0 feeding zero weight rows -> numerics safe."""
    # TODO(synk): on v6e/v7x consider rounding dims near a 256 boundary up to 256
    #             (2x256x256 MXU); on v5e keep 128.
    # TODO(synk): add an fp8(e4m3) weight path with per-channel scales for v7x.
    in_dim, h1, h2, out_dim = w1.shape[1], w1.shape[0], w2.shape[0], w3.shape[0]
    in_p, h1_p, h2_p, out_p = (_round_up(d, 128) for d in (in_dim, h1, h2, out_dim))

    def prep_w(w, rows_p, cols_p):
        wt = jnp.asarray(w, jnp.float32).T                     # [in, out]
        wt = jnp.pad(wt, ((0, rows_p - wt.shape[0]), (0, cols_p - wt.shape[1])))
        return wt.astype(matmul_dtype)

    def prep_b(b, cols_p):
        b = jnp.asarray(b, jnp.float32)[None, :]
        return jnp.pad(b, ((0, 0), (0, cols_p - b.shape[1])))

    params = (prep_w(w1, in_p, h1_p), prep_b(b1, h1_p),
              prep_w(w2, h1_p, h2_p), prep_b(b2, h2_p),
              prep_w(w3, h2_p, out_p), prep_b(b3, out_p))
    return params, out_dim


@functools.partial(jax.jit,
                   static_argnames=("out_dim", "single_buffer_weights", "out_dtype"))
def mlp_forward(x, w1t, b1r, w2t, b2r, w3t, b3r, *, out_dim,
                single_buffer_weights=True, out_dtype=None):
    """x: [B, inputdim] f32; prepared params from prepare_mlp_params. Returns [B, out_dim]."""
    B, in_dim = x.shape
    in_p, h1_p = w1t.shape
    _, h2_p = w2t.shape
    _, out_p = w3t.shape
    mm_dtype = w1t.dtype

    out_dtype = x.dtype if out_dtype is None else jnp.dtype(out_dtype)
    out_itemsize = jnp.dtype(out_dtype).itemsize

    vmem_cap, has_bf16_vpu, num_cores = _tpu_info()
    use_single_buffer = bool(single_buffer_weights) and _supports_buffered_specs()
    weight_copies = 1 if use_single_buffer else 2
    # bf16 elementwise halves VALU/EUP work on v6e/v7x; v5e keeps f32 (no bf16 VPU).
    act_dtype = mm_dtype if has_bf16_vpu else jnp.float32

    weight_bytes = sum(int(a.size) * a.dtype.itemsize
                       for a in (w1t, b1r, w2t, b2r, w3t, b3r))
    vmem_budget = int(0.75 * vmem_cap)

    # ---- batch tile: as big as the generation-aware VMEM budget allows ----
    per_row_bytes = (2 * (in_p * 2 + out_p * out_itemsize)            # dbl-buffered x/out
                     + 2 * (h1_p + h2_p) * 4)                         # f32 interm. headroom
    avail = vmem_budget - weight_copies * weight_bytes - (4 << 20)
    tm_vmem = max(16, (avail // per_row_bytes) // 16 * 16) if avail > 0 else 16
    tm_cap = 256 if num_cores > 1 else 512
    TM = min(tm_cap, tm_vmem, _round_up(B, 16))
    if num_cores > 1 and B >= 32:
        # ensure >= 2 grid steps so the "parallel" axis feeds both v7x TensorCores
        TM = min(TM, _round_up(-(-B // 2), 16))
    TM = max(16, (TM // 16) * 16)
    B_p = _round_up(B, TM)
    grid = (B_p // TM,)

    # sub-chunking inside the kernel (chunk rows must stay a multiple of 8 sublanes)
    if TM >= 128 and TM % 32 == 0:
        n_chunks = 4
    elif TM >= 32 and TM % 16 == 0:
        n_chunks = 2
    else:
        n_chunks = 1

    # ---- skip host-side pad/cast when already aligned ----
    x_p = x if x.dtype == mm_dtype else x.astype(mm_dtype)
    if B_p != B or in_p != in_dim:
        x_p = jnp.pad(x_p, ((0, B_p - B), (0, in_p - in_dim)))

    # ---- VMEM budget / cost estimate ----
    act_bytes = 2 * TM * (in_p * 2 + out_p * out_itemsize)
    interm_bytes = TM * (h1_p + h2_p) * 4
    vmem_needed = weight_copies * weight_bytes + act_bytes + 2 * interm_bytes
    vmem_limit = int(min(max(vmem_needed + (4 << 20), 8 << 20), vmem_budget))
    # TODO(synk): if resident weights alone exceed vmem_budget (very large hidden dims,
    #             esp. v7x's 64 MiB), fall back to an N/K-tiled multi-pass variant
    #             instead of letting compilation fail.

    flops = 2 * B_p * (in_p * h1_p + h1_p * h2_p + h2_p * out_p)
    transcendentals = B_p * (h1_p + h2_p)                      # one erf per GELU element
    bytes_accessed = B_p * in_p * 2 + B_p * out_p * out_itemsize + weight_bytes

    def resident(a):
        kwargs = {}
        if use_single_buffer:
            kwargs["pipeline_mode"] = pl.Buffered(1)           # no double-buffer for
        return pl.BlockSpec(a.shape, lambda i: (0, 0), **kwargs)  # constant-index weights

    kernel = functools.partial(mlp_kernel, n_chunks=n_chunks, act_dtype=act_dtype)

    out_padded = pl.pallas_call(
        kernel,
        out_shape=jax.ShapeDtypeStruct((B_p, out_p), out_dtype),
        grid=grid,
        in_specs=[
            pl.BlockSpec((TM, in_p), lambda i: (i, 0)),        # x: batch-tiled, pipelined
            resident(w1t), resident(b1r),                      # weights/biases resident
            resident(w2t), resident(b2r),
            resident(w3t), resident(b3r),
        ],
        out_specs=pl.BlockSpec((TM, out_p), lambda i: (i, 0)),
        compiler_params=pltpu.CompilerParams(
            dimension_semantics=("parallel",),
            vmem_limit_bytes=vmem_limit,
        ),
        cost_estimate=pl.CostEstimate(
            flops=int(flops),
            transcendentals=int(transcendentals),
            bytes_accessed=int(bytes_accessed),
        ),
    )(x_p, w1t, b1r, w2t, b2r, w3t, b3r)

    if B_p == B and out_p == out_dim:
        return out_padded
    return out_padded[:B, :out_dim]


def init_mlp_params(key, inputdim, outputdim1, outputdim2, outputdim):
    """Deterministic synthetic params; PyTorch Linear weight convention [out, in].
    (The PyTorch module also takes `outputdim3`, but its forward never uses it.)"""
    ks = jax.random.split(key, 6)

    def lin(kw, kb, fan_in, fan_out):
        bound = 1.0 / jnp.sqrt(fan_in)
        w = jax.random.uniform(kw, (fan_out, fan_in), jnp.float32, -bound, bound)
        b = jax.random.uniform(kb, (fan_out,), jnp.float32, -bound, bound)
        return w, b

    w1, b1 = lin(ks[0], ks[1], inputdim, outputdim1)
    w2, b2 = lin(ks[2], ks[3], outputdim1, outputdim2)
    w3, b3 = lin(ks[4], ks[5], outputdim2, outputdim)
    return w1, b1, w2, b2, w3, b3


if __name__ == "__main__":
    # Small shapes consistent with MLP(inputdim, outputdim1, outputdim2, outputdim3, outputdim).
    batch = 8
    inputdim, outputdim1, outputdim2, outputdim = 32, 64, 32, 16

    key = jax.random.PRNGKey(0)
    kx, kp = jax.random.split(key)
    x = jax.random.normal(kx, (batch, inputdim), jnp.float32)
    raw_params = init_mlp_params(kp, inputdim, outputdim1, outputdim2, outputdim)

    prepared, out_dim = prepare_mlp_params(*raw_params)

    def run(single_buffer):
        out = mlp_forward(x, *prepared, out_dim=out_dim,
                          single_buffer_weights=single_buffer)
        return jax.block_until_ready(out)

    try:
        out = run(True)        # preferred: single-buffered resident weights
    except Exception:
        out = run(False)       # robust fallback: default double-buffering

    # Reference in plain f32 JAX (same math as the PyTorch module). Tolerance is
    # loosened because the kernel feeds bf16 to the MXU (f32 accumulation) and,
    # on v6e/v7x, runs the bias-add + erf-GELU in bf16.
    w1, b1, w2, b2, w3, b3 = raw_params
    ref = _gelu_exact(x @ w1.T + b1)
    ref = _gelu_exact(ref @ w2.T + b2)
    ref = ref @ w3.T + b3
    assert out.shape == (batch, outputdim)
    err = float(jnp.max(jnp.abs(out.astype(jnp.float32) - ref)))
    assert jnp.allclose(out.astype(jnp.float32), ref, atol=5e-2, rtol=5e-2), err

    print("KERNEL_OK")
</pallas_src>

<mosaic_0001>
module attributes {stable_mosaic.version = 11 : i64} {
  func.func @mlp_kernel(%arg0: i32, %arg1: memref<16x128xbf16, #tpu.memory_space<vmem>>, %arg2: memref<128x128xbf16, #tpu.memory_space<vmem>>, %arg3: memref<1x128xf32, #tpu.memory_space<vmem>>, %arg4: memref<128x128xbf16, #tpu.memory_space<vmem>>, %arg5: memref<1x128xf32, #tpu.memory_space<vmem>>, %arg6: memref<128x128xbf16, #tpu.memory_space<vmem>>, %arg7: memref<1x128xf32, #tpu.memory_space<vmem>>, %arg8: memref<16x128xf32, #tpu.memory_space<vmem>>) attributes {dimension_semantics = [#tpu.dimension_semantics<parallel>], iteration_bounds = array<i64: 1>, scalar_prefetch = 0 : i64, scratch_operands = 0 : i64, tpu.core_type = #tpu.core_type<tc>, window_params = [{transform_indices = @transform_0, window_bounds = array<i64: 16, 128>}, {pipeline_mode = #tpu.pipeline_mode<synchronous>, transform_indices = @transform_1, window_bounds = array<i64: 128, 128>}, {pipeline_mode = #tpu.pipeline_mode<synchronous>, transform_indices = @transform_2, window_bounds = array<i64: 1, 128>}, {pipeline_mode = #tpu.pipeline_mode<synchronous>, transform_indices = @transform_3, window_bounds = array<i64: 128, 128>}, {pipeline_mode = #tpu.pipeline_mode<synchronous>, transform_indices = @transform_4, window_bounds = array<i64: 1, 128>}, {pipeline_mode = #tpu.pipeline_mode<synchronous>, transform_indices = @transform_5, window_bounds = array<i64: 128, 128>}, {pipeline_mode = #tpu.pipeline_mode<synchronous>, transform_indices = @transform_6, window_bounds = array<i64: 1, 128>}, {transform_indices = @transform_7, window_bounds = array<i64: 16, 128>}]} {
    %c0 = arith.constant 0 : index
    %c0_0 = arith.constant 0 : index
    %0 = vector.load %arg1[%c0, %c0_0] : memref<16x128xbf16, #tpu.memory_space<vmem>>, vector<16x128xbf16>
    %c0_1 = arith.constant 0 : index
    %c0_2 = arith.constant 0 : index
    %1 = vector.load %arg2[%c0_1, %c0_2] : memref<128x128xbf16, #tpu.memory_space<vmem>>, vector<128x128xbf16>
    %cst = arith.constant dense<0.000000e+00> : vector<16x128xf32>
    %2 = tpu.matmul %0, %1, %cst {dimension_numbers = #tpu.dot_dimension_numbers<[1], [0], [0], [1], [0, 0, 1, 1], [], []>} : vector<16x128xbf16>, vector<128x128xbf16>, vector<16x128xf32> -> vector<16x128xf32>
    %c0_3 = arith.constant 0 : index
    %c0_4 = arith.constant 0 : index
    %3 = vector.load %arg3[%c0_3, %c0_4] : memref<1x128xf32, #tpu.memory_space<vmem>>, vector<1x128xf32>
    %4 = vector.broadcast %3 : vector<1x128xf32> to vector<16x128xf32>
    %5 = arith.addf %2, %4 : vector<16x128xf32>
    %6 = arith.truncf %5 : vector<16x128xf32> to vector<16x128xbf16>
    %cst_5 = arith.constant 5.000000e-01 : bf16
    %7 = vector.broadcast %cst_5 : bf16 to vector<16x128xbf16>
    %8 = arith.mulf %7, %6 : vector<16x128xbf16>
    %cst_6 = arith.constant 7.070310e-01 : bf16
    %9 = vector.broadcast %cst_6 : bf16 to vector<16x128xbf16>
    %10 = arith.mulf %6, %9 : vector<16x128xbf16>
    %11 = math.erf %10 : vector<16x128xbf16>
    %cst_7 = arith.constant 1.000000e+00 : bf16
    %12 = vector.broadcast %cst_7 : bf16 to vector<16x128xbf16>
    %13 = arith.addf %12, %11 : vector<16x128xbf16>
    %14 = arith.mulf %8, %13 : vector<16x128xbf16>
    %c0_8 = arith.constant 0 : index
    %c0_9 = arith.constant 0 : index
    %15 = vector.load %arg4[%c0_8, %c0_9] : memref<128x128xbf16, #tpu.memory_space<vmem>>, vector<128x128xbf16>
    %cst_10 = arith.constant dense<0.000000e+00> : vector<16x128xf32>
    %16 = tpu.matmul %14, %15, %cst_10 {dimension_numbers = #tpu.dot_dimension_numbers<[1], [0], [0], [1], [0, 0, 1, 1], [], []>} : vector<16x128xbf16>, vector<128x128xbf16>, vector<16x128xf32> -> vector<16x128xf32>
    %c0_11 = arith.constant 0 : index
    %c0_12 = arith.constant 0 : index
    %17 = vector.load %arg5[%c0_11, %c0_12] : memref<1x128xf32, #tpu.memory_space<vmem>>, vector<1x128xf32>
    %18 = vector.broadcast %17 : vector<1x128xf32> to vector<16x128xf32>
    %19 = arith.addf %16, %18 : vector<16x128xf32>
    %20 = arith.truncf %19 : vector<16x128xf32> to vector<16x128xbf16>
    %cst_13 = arith.constant 5.000000e-01 : bf16
    %21 = vector.broadcast %cst_13 : bf16 to vector<16x128xbf16>
    %22 = arith.mulf %21, %20 : vector<16x128xbf16>
    %cst_14 = arith.constant 7.070310e-01 : bf16
    %23 = vector.broadcast %cst_14 : bf16 to vector<16x128xbf16>
    %24 = arith.mulf %20, %23 : vector<16x128xbf16>
    %25 = math.erf %24 : vector<16x128xbf16>
    %cst_15 = arith.constant 1.000000e+00 : bf16
    %26 = vector.broadcast %cst_15 : bf16 to vector<16x128xbf16>
    %27 = arith.addf %26, %25 : vector<16x128xbf16>
    %28 = arith.mulf %22, %27 : vector<16x128xbf16>
    %c0_16 = arith.constant 0 : index
    %c0_17 = arith.constant 0 : index
    %29 = vector.load %arg6[%c0_16, %c0_17] : memref<128x128xbf16, #tpu.memory_space<vmem>>, vector<128x128xbf16>
    %cst_18 = arith.constant dense<0.000000e+00> : vector<16x128xf32>
    %30 = tpu.matmul %28, %29, %cst_18 {dimension_numbers = #tpu.dot_dimension_numbers<[1], [0], [0], [1], [0, 0, 1, 1], [], []>} : vector<16x128xbf16>, vector<128x128xbf16>, vector<16x128xf32> -> vector<16x128xf32>
    %c0_19 = arith.constant 0 : index
    %c0_20 = arith.constant 0 : index
    %31 = vector.load %arg7[%c0_19, %c0_20] : memref<1x128xf32, #tpu.memory_space<vmem>>, vector<1x128xf32>
    %32 = vector.broadcast %31 : vector<1x128xf32> to vector<16x128xf32>
    %33 = arith.addf %30, %32 : vector<16x128xf32>
    %c0_21 = arith.constant 0 : index
    %c0_22 = arith.constant 0 : index
    %34 = vector.load %arg8[%c0_21, %c0_22] : memref<16x128xf32, #tpu.memory_space<vmem>>, vector<16x128xf32>
    tpu.vector_store %arg8[%c0_21, %c0_22], %33 {strides = array<i32>} : memref<16x128xf32, #tpu.memory_space<vmem>>, vector<16x128xf32>,
    return
  }
  func.func @transform_0(%arg0: i32) -> (i32, i32) {
    %c0_i32 = arith.constant 0 : i32
    %c0_i32_0 = arith.constant 0 : i32
    return %arg0, %c0_i32 : i32, i32
  }
  func.func @transform_1(%arg0: i32) -> (i32, i32) {
    %c0_i32 = arith.constant 0 : i32
    %c0_i32_0 = arith.constant 0 : i32
    %c0_i32_1 = arith.constant 0 : i32
    return %c0_i32, %c0_i32_0 : i32, i32
  }
  func.func @transform_2(%arg0: i32) -> (i32, i32) {
    %c0_i32 = arith.constant 0 : i32
    %c0_i32_0 = arith.constant 0 : i32
    %c0_i32_1 = arith.constant 0 : i32
    return %c0_i32, %c0_i32_0 : i32, i32
  }
  func.func @transform_3(%arg0: i32) -> (i32, i32) {
    %c0_i32 = arith.constant 0 : i32
    %c0_i32_0 = arith.constant 0 : i32
    %c0_i32_1 = arith.constant 0 : i32
    return %c0_i32, %c0_i32_0 : i32, i32
  }
  func.func @transform_4(%arg0: i32) -> (i32, i32) {
    %c0_i32 = arith.constant 0 : i32
    %c0_i32_0 = arith.constant 0 : i32
    %c0_i32_1 = arith.constant 0 : i32
    return %c0_i32, %c0_i32_0 : i32, i32
  }
  func.func @transform_5(%arg0: i32) -> (i32, i32) {
    %c0_i32 = arith.constant 0 : i32
    %c0_i32_0 = arith.constant 0 : i32
    %c0_i32_1 = arith.constant 0 : i32
    return %c0_i32, %c0_i32_0 : i32, i32
  }
  func.func @transform_6(%arg0: i32) -> (i32, i32) {
    %c0_i32 = arith.constant 0 : i32
    %c0_i32_0 = arith.constant 0 : i32
    %c0_i32_1 = arith.constant 0 : i32
    return %c0_i32, %c0_i32_0 : i32, i32
  }
  func.func @transform_7(%arg0: i32) -> (i32, i32) {
    %c0_i32 = arith.constant 0 : i32
    %c0_i32_0 = arith.constant 0 : i32
    return %arg0, %c0_i32 : i32, i32
  }
}

module attributes {stable_mosaic.version = 11 : i64} {
  func.func @mlp_kernel(%arg0: i32, %arg1: memref<16x128xbf16, #tpu.memory_space<vmem>>, %arg2: memref<128x128xbf16, #tpu.memory_space<vmem>>, %arg3: memref<1x128xf32, #tpu.memory_space<vmem>>, %arg4: memref<128x128xbf16, #tpu.memory_space<vmem>>, %arg5: memref<1x128xf32, #tpu.memory_space<vmem>>, %arg6: memref<128x128xbf16, #tpu.memory_space<vmem>>, %arg7: memref<1x128xf32, #tpu.memory_space<vmem>>, %arg8: memref<16x128xf32, #tpu.memory_space<vmem>>) attributes {dimension_semantics = [#tpu.dimension_semantics<parallel>], iteration_bounds = array<i64: 1>, scalar_prefetch = 0 : i64, scratch_operands = 0 : i64, tpu.core_type = #tpu.core_type<tc>, window_params = [{transform_indices = @transform_0, window_bounds = array<i64: 16, 128>}, {pipeline_mode = #tpu.pipeline_mode<synchronous>, transform_indices = @transform_1, window_bounds = array<i64: 128, 128>}, {pipeline_mode = #tpu.pipeline_mode<synchronous>, transform_indices = @transform_2, window_bounds = array<i64: 1, 128>}, {pipeline_mode = #tpu.pipeline_mode<synchronous>, transform_indices = @transform_3, window_bounds = array<i64: 128, 128>}, {pipeline_mode = #tpu.pipeline_mode<synchronous>, transform_indices = @transform_4, window_bounds = array<i64: 1, 128>}, {pipeline_mode = #tpu.pipeline_mode<synchronous>, transform_indices = @transform_5, window_bounds = array<i64: 128, 128>}, {pipeline_mode = #tpu.pipeline_mode<synchronous>, transform_indices = @transform_6, window_bounds = array<i64: 1, 128>}, {transform_indices = @transform_7, window_bounds = array<i64: 16, 128>}]} {
    %c0 = arith.constant 0 : index
    %c0_0 = arith.constant 0 : index
    %0 = vector.load %arg1[%c0, %c0_0] : memref<16x128xbf16, #tpu.memory_space<vmem>>, vector<16x128xbf16>
    %c0_1 = arith.constant 0 : index
    %c0_2 = arith.constant 0 : index
    %1 = vector.load %arg2[%c0_1, %c0_2] : memref<128x128xbf16, #tpu.memory_space<vmem>>, vector<128x128xbf16>
    %cst = arith.constant dense<0.000000e+00> : vector<16x128xf32>
    %2 = tpu.matmul %0, %1, %cst {dimension_numbers = #tpu.dot_dimension_numbers<[1], [0], [0], [1], [0, 0, 1, 1], [], []>} : vector<16x128xbf16>, vector<128x128xbf16>, vector<16x128xf32> -> vector<16x128xf32>
    %c0_3 = arith.constant 0 : index
    %c0_4 = arith.constant 0 : index
    %3 = vector.load %arg3[%c0_3, %c0_4] : memref<1x128xf32, #tpu.memory_space<vmem>>, vector<1x128xf32>
    %4 = vector.broadcast %3 : vector<1x128xf32> to vector<16x128xf32>
    %5 = arith.addf %2, %4 : vector<16x128xf32>
    %6 = arith.truncf %5 : vector<16x128xf32> to vector<16x128xbf16>
    %cst_5 = arith.constant 5.000000e-01 : bf16
    %7 = vector.broadcast %cst_5 : bf16 to vector<16x128xbf16>
    %8 = arith.mulf %7, %6 : vector<16x128xbf16>
    %cst_6 = arith.constant 7.070310e-01 : bf16
    %9 = vector.broadcast %cst_6 : bf16 to vector<16x128xbf16>
    %10 = arith.mulf %6, %9 : vector<16x128xbf16>
    %11 = math.erf %10 : vector<16x128xbf16>
    %cst_7 = arith.constant 1.000000e+00 : bf16
    %12 = vector.broadcast %cst_7 : bf16 to vector<16x128xbf16>
    %13 = arith.addf %12, %11 : vector<16x128xbf16>
    %14 = arith.mulf %8, %13 : vector<16x128xbf16>
    %c0_8 = arith.constant 0 : index
    %c0_9 = arith.constant 0 : index
    %15 = vector.load %arg4[%c0_8, %c0_9] : memref<128x128xbf16, #tpu.memory_space<vmem>>, vector<128x128xbf16>
    %cst_10 = arith.constant dense<0.000000e+00> : vector<16x128xf32>
    %16 = tpu.matmul %14, %15, %cst_10 {dimension_numbers = #tpu.dot_dimension_numbers<[1], [0], [0], [1], [0, 0, 1, 1], [], []>} : vector<16x128xbf16>, vector<128x128xbf16>, vector<16x128xf32> -> vector<16x128xf32>
    %c0_11 = arith.constant 0 : index
    %c0_12 = arith.constant 0 : index
    %17 = vector.load %arg5[%c0_11, %c0_12] : memref<1x128xf32, #tpu.memory_space<vmem>>, vector<1x128xf32>
    %18 = vector.broadcast %17 : vector<1x128xf32> to vector<16x128xf32>
    %19 = arith.addf %16, %18 : vector<16x128xf32>
    %20 = arith.truncf %19 : vector<16x128xf32> to vector<16x128xbf16>
    %cst_13 = arith.constant 5.000000e-01 : bf16
    %21 = vector.broadcast %cst_13 : bf16 to vector<16x128xbf16>
    %22 = arith.mulf %21, %20 : vector<16x128xbf16>
    %cst_14 = arith.constant 7.070310e-01 : bf16
    %23 = vector.broadcast %cst_14 : bf16 to vector<16x128xbf16>
    %24 = arith.mulf %20, %23 : vector<16x128xbf16>
    %25 = math.erf %24 : vector<16x128xbf16>
    %cst_15 = arith.constant 1.000000e+00 : bf16
    %26 = vector.broadcast %cst_15 : bf16 to vector<16x128xbf16>
    %27 = arith.addf %26, %25 : vector<16x128xbf16>
    %28 = arith.mulf %22, %27 : vector<16x128xbf16>
    %c0_16 = arith.constant 0 : index
    %c0_17 = arith.constant 0 : index
    %29 = vector.load %arg6[%c0_16, %c0_17] : memref<128x128xbf16, #tpu.memory_space<vmem>>, vector<128x128xbf16>
    %cst_18 = arith.constant dense<0.000000e+00> : vector<16x128xf32>
    %30 = tpu.matmul %28, %29, %cst_18 {dimension_numbers = #tpu.dot_dimension_numbers<[1], [0], [0], [1], [0, 0, 1, 1], [], []>} : vector<16x128xbf16>, vector<128x128xbf16>, vector<16x128xf32> -> vector<16x128xf32>
    %c0_19 = arith.constant 0 : index
    %c0_20 = arith.constant 0 : index
    %31 = vector.load %arg7[%c0_19, %c0_20] : memref<1x128xf32, #tpu.memory_space<vmem>>, vector<1x128xf32>
    %32 = vector.broadcast %31 : vector<1x128xf32> to vector<16x128xf32>
    %33 = arith.addf %30, %32 : vector<16x128xf32>
    %c0_21 = arith.constant 0 : index
    %c0_22 = arith.constant 0 : index
    %34 = vector.load %arg8[%c0_21, %c0_22] : memref<16x128xf32, #tpu.memory_space<vmem>>, vector<16x128xf32>
    tpu.vector_store %arg8[%c0_21, %c0_22], %33 {strides = array<i32>} : memref<16x128xf32, #tpu.memory_space<vmem>>, vector<16x128xf32>,
    return
  }
  func.func @transform_0(%arg0: i32) -> (i32, i32) {
    %c0_i32 = arith.constant 0 : i32
    %c0_i32_0 = arith.constant 0 : i32
    return %arg0, %c0_i32 : i32, i32
  }
  func.func @transform_1(%arg0: i32) -> (i32, i32) {
    %c0_i32 = arith.constant 0 : i32
    %c0_i32_0 = arith.constant 0 : i32
    %c0_i32_1 = arith.constant 0 : i32
    return %c0_i32, %c0_i32_0 : i32, i32
  }
  func.func @transform_2(%arg0: i32) -> (i32, i32) {
    %c0_i32 = arith.constant 0 : i32
    %c0_i32_0 = arith.constant 0 : i32
    %c0_i32_1 = arith.constant 0 : i32
    return %c0_i32, %c0_i32_0 : i32, i32
  }
  func.func @transform_3(%arg0: i32) -> (i32, i32) {
    %c0_i32 = arith.constant 0 : i32
    %c0_i32_0 = arith.constant 0 : i32
    %c0_i32_1 = arith.constant 0 : i32
    return %c0_i32, %c0_i32_0 : i32, i32
  }
  func.func @transform_4(%arg0: i32) -> (i32, i32) {
    %c0_i32 = arith.constant 0 : i32
    %c0_i32_0 = arith.constant 0 : i32
    %c0_i32_1 = arith.constant 0 : i32
    return %c0_i32, %c0_i32_0 : i32, i32
  }
  func.func @transform_5(%arg0: i32) -> (i32, i32) {
    %c0_i32 = arith.constant 0 : i32
    %c0_i32_0 = arith.constant 0 : i32
    %c0_i32_1 = arith.constant 0 : i32
    return %c0_i32, %c0_i32_0 : i32, i32
  }
  func.func @transform_6(%arg0: i32) -> (i32, i32) {
    %c0_i32 = arith.constant 0 : i32
    %c0_i32_0 = arith.constant 0 : i32
    %c0_i32_1 = arith.constant 0 : i32
    return %c0_i32, %c0_i32_0 : i32, i32
  }
  func.func @transform_7(%arg0: i32) -> (i32, i32) {
    %c0_i32 = arith.constant 0 : i32
    %c0_i32_0 = arith.constant 0 : i32
    return %arg0, %c0_i32 : i32, i32
  }
}

</mosaic_0001>

<bundles_post_ra>
// kernel: mlp_forward.1
= control target key start
LH: loop header
LB: loop body
LE: loop exit
PB: predicated region body
PF: predicated region fallthrough
CT: control target
= control target key end

     0   :  { %12 = vsyncpa [#allocation3], 0  ;;  %s803_s0 = inlined_call_operand.vmem [shape: bf16[16,128], index: 0, kind: input, shape index: {}]   ;;  %s804_s1 = inlined_call_operand.hbm [shape: bf16[128,128], index: 1, kind: input, shape index: {}]   ;;  %s805_s2 = inlined_call_operand.vmem [shape: f32[1,128], index: 2, kind: input, shape index: {}]   ;;  %s806_s3 = inlined_call_operand.hbm [shape: bf16[128,128], index: 3, kind: input, shape index: {}]   ;;  %s807_s4 = inlined_call_operand.vmem [shape: f32[1,128], index: 4, kind: input, shape index: {}]   ;;  %s808_s5 = inlined_call_operand.hbm [shape: bf16[128,128], index: 5, kind: input, shape index: {}]   ;;  %s809_s6 = inlined_call_operand.vmem [shape: f32[1,128], index: 6, kind: input, shape index: {}]   ;;  %s810_s7 = inlined_call_operand.vmem [shape: f32[16,128], index: 7, kind: output, shape index: {}]  }
   0x1   :  { %13 = vsyncpa [#allocation5], 0  ;;  %s656_s24 = smov [#allocation4]   ;;  %s657_s26 = smov [#allocation2]  }
   0x2   :  { %s35_s25 = sshll.u32 %s656_s24, 4  ;;  %s21_s27 = sshll.u32 %s657_s26, 4  ;;  %s36_s25 = int_to_ptr.vmem [resolvable:$true] %s35_s25  ;;  %s703_s27 = int_to_ptr.vmem [resolvable:$true] %s21_s27 }
   0x3   :  { %s586_s30 = scalar_lea.hbm %s806_s3, 1024 }
   0x4   :  { %p587_p0 = scmp.ne.s32.totalorder %s806_s3, %s586_s30  ;;  %p590_p1 = scmp.lt.u32.totalorder %s586_s30, %s806_s3 }
   0x6   :  { %p592_p2 = pnand %p590_p1, %p587_p0 }
   0x8   :  { %595 = shalt.err (!%p592_p2)
}
   0x9   :  { %s596_s12 = scalar_lea.vmem %s36_s25, 1024  ;;  %p601_p4 = scmp.lt.s32.totalorder %s36_s25, %s36_s25 }
   0xa   :  { %p597_p3 = scmp.ne.s32.totalorder %s36_s25, %s596_s12  ;;  %p602_p5 = scmp.lt.s32.totalorder %s596_s12, %s596_s12 }
   0xc   :  { %p603_p6 = por %p602_p5, %p601_p4 }
   0xe   :  { %p604_p7 = pnand %p603_p6, %p597_p3 }
  0x10   :  { %607 = shalt.err (!%p604_p7)
}
  0x11   :  { %s658_s13 = smov 64   ;;  %s659_s14 = smov 4  }
  0x12   :  { %41 = dma.hbm_to_vmem [thread:$0]  %s806_s3, 1024, %s36_s25, [#allocation5], %s658_s13, %s658_s13, %s659_s14  }
  0x13   :  { %s608_s19 = scalar_lea.hbm %s804_s1, 1024 }
  0x14   :  { %p609_p8 = scmp.ne.s32.totalorder %s804_s1, %s608_s19  ;;  %p612_p9 = scmp.lt.u32.totalorder %s608_s19, %s804_s1 }
  0x16   :  { %p614_p10 = pnand %p612_p9, %p609_p8 }
  0x18   :  { %617 = shalt.err (!%p614_p10)
}
  0x19   :  { %s618_s24 = scalar_lea.vmem %s703_s27, 1024  ;;  %p623_p12 = scmp.lt.s32.totalorder %s703_s27, %s703_s27 }
  0x1a   :  { %p619_p11 = scmp.ne.s32.totalorder %s703_s27, %s618_s24  ;;  %p624_p13 = scmp.lt.s32.totalorder %s618_s24, %s618_s24 }
  0x1c   :  { %p625_p0 = por %p624_p13, %p623_p12 }
  0x1e   :  { %p626_p1 = pnand %p625_p0, %p619_p11 }
  0x20   :  { %629 = shalt.err (!%p626_p1)
}
  0x21   :  { %27 = dma.hbm_to_vmem [thread:$0]  %s804_s1, 1024, %s703_s27, [#allocation3], %s658_s13, %s658_s13, %s659_s14  }
  0x22   :  { %s660_s26 = smov [#allocation6]   ;;  %s630_s8 = scalar_lea.hbm %s808_s5, 1024 }
  0x23   :  { %s49_s28 = sshll.u32 %s660_s26, 4  ;;  %p631_p2 = scmp.ne.s32.totalorder %s808_s5, %s630_s8  ;;  %s50_s28 = int_to_ptr.vmem [resolvable:$true] %s49_s28 }
  0x24   :  { %p634_p3 = scmp.lt.u32.totalorder %s630_s8, %s808_s5 }
  0x26   :  { %p636_p4 = pnand %p634_p3, %p631_p2 }
  0x28   :  { %639 = shalt.err (!%p636_p4)
}
  0x29   :  { %s640_s15 = scalar_lea.vmem %s50_s28, 1024  ;;  %p645_p6 = scmp.lt.s32.totalorder %s50_s28, %s50_s28 }
  0x2a   :  { %p641_p5 = scmp.ne.s32.totalorder %s50_s28, %s640_s15  ;;  %p646_p7 = scmp.lt.s32.totalorder %s640_s15, %s640_s15 }
  0x2c   :  { %p647_p8 = por %p646_p7, %p645_p6 }
  0x2e   :  { %p648_p9 = pnand %p647_p8, %p641_p5 }
  0x30   :  { %651 = shalt.err (!%p648_p9)
}
  0x31   :  { %55 = dma.hbm_to_vmem [thread:$0]  %s808_s5, 1024, %s50_s28, [#allocation5], %s658_s13, %s658_s13, %s659_s14  }
  0x32   :  { %652 = dma.done.wait [#allocation3], 1024  }
  0x33   :  { %653 = vsyncadd [#allocation3], 4294966272 }
  0x34   :  { %654 = dma.done.wait [#allocation5], 2048  }
  0x35   :  { %655 = vsyncadd [#allocation5], 4294965248  ;;  %v661_v0 = vmov 0.0   ;;  %vm662_vm0 = vmmov 0   ;;  %v557_v1 = vld [vmem:[#allocation2] sm:$0xff]   ;;  %v558_v2 = vld [vmem:[#allocation2 + $0x8] sm:$0xff]  }
  0x36   :  { %490 = vmatprep.subr.bf16.mxu0 %v661_v0  ;;  %506 = vmatprep.mubr.msk.bf16.mxu0 %vm662_vm0, %v661_v0  ;;  %v559_v3 = vld [vmem:[#allocation2 + $0x10] sm:$0xff]   ;;  %v566_v4 = vld [vmem:[#allocation4] sm:$0xff]   ;;  %v560_v5 = vld [vmem:[#allocation2 + $0x18] sm:$0xff]  }
  0x37   :  { %510 = vmatprep.subr.bf16.mxu1 %v661_v0  ;;  %526 = vmatprep.mubr.msk.bf16.mxu1 %vm662_vm0, %v661_v0  ;;  %v567_v6 = vld [vmem:[#allocation4 + $0x8] sm:$0xff]   ;;  %v561_v7 = vld [vmem:[#allocation2 + $0x20] sm:$0xff]   ;;  %v563_v9 = vld [vmem:[#allocation2 + $0x30] sm:$0xff]  }
  0x38   :  { %491 = vmatpush3.bf16.msra.mxu0 %v557_v1  ;;  %511 = vmatpush3.bf16.msra.mxu1 %v566_v4  ;;  %v562_v8 = vld [vmem:[#allocation2 + $0x28] sm:$0xff]   ;;  %v564_v10 = vld [vmem:[#allocation2 + $0x38] sm:$0xff]   ;;  %v565_v11 = vld [vmem:[%s803_s0] sm:$0xff]  }
  0x39   :  { %492 = vmatprep.subr.bf16.mxu0 %v661_v0  ;;  %512 = vmatprep.subr.bf16.mxu1 %v661_v0  ;;  %v568_v12 = vld [vmem:[#allocation4 + $0x10] sm:$0xff]   ;;  %v569_v13 = vld [vmem:[#allocation4 + $0x18] sm:$0xff]   ;;  %v570_v14 = vld [vmem:[#allocation4 + $0x20] sm:$0xff]  }
  0x3a   :  { %v571_v15 = vld [vmem:[#allocation4 + $0x28] sm:$0xff]   ;;  %v572_v16 = vld [vmem:[#allocation4 + $0x30] sm:$0xff]   ;;  %v573_v17 = vld [vmem:[#allocation4 + $0x38] sm:$0xff]  }
  0x3b   :  { %v574_v18 = vld [vmem:[#allocation6] sm:$0xff]   ;;  %v575_v19 = vld [vmem:[#allocation6 + $0x8] sm:$0xff]   ;;  %v576_v33 = vld [vmem:[#allocation6 + $0x10] sm:$0xff]  }
  0x3c   :  { %493 = vmatpush3.bf16.msra.mxu0 %v558_v2  ;;  %513 = vmatpush3.bf16.msra.mxu1 %v567_v6  ;;  %v435_v20 = vld [vmem:[%s805_s2] ss:$0 sm:$0xff]  ;;  %v577_v34 = vld [vmem:[#allocation6 + $0x18] sm:$0xff]   ;;  %v579_v36 = vld [vmem:[#allocation6 + $0x28] sm:$0xff]  }
  0x3d   :  { %494 = vmatprep.subr.bf16.mxu0 %v661_v0  ;;  %514 = vmatprep.subr.bf16.mxu1 %v661_v0  ;;  %v578_v35 = vld [vmem:[#allocation6 + $0x20] sm:$0xff]   ;;  %v580_v37 = vld [vmem:[#allocation6 + $0x30] sm:$0xff]   ;;  %v581_v38 = vld [vmem:[#allocation6 + $0x38] sm:$0xff]  }
  0x3e   :  { %v445_v39 = vld [vmem:[%s807_s4] ss:$0 sm:$0xff] }
  0x3f   :  { %v454_v52 = vld [vmem:[%s809_s6] ss:$0 sm:$0xff] }
  0x40   :  { %495 = vmatpush3.bf16.msra.mxu0 %v559_v3  ;;  %515 = vmatpush3.bf16.msra.mxu1 %v568_v12 }
  0x41   :  { %496 = vmatprep.subr.bf16.mxu0 %v661_v0  ;;  %516 = vmatprep.subr.bf16.mxu1 %v661_v0 }
  0x44   :  { %497 = vmatpush3.bf16.msra.mxu0 %v560_v5  ;;  %517 = vmatpush3.bf16.msra.mxu1 %v569_v13 }
  0x45   :  { %498 = vmatprep.subr.bf16.mxu0 %v661_v0  ;;  %518 = vmatprep.subr.bf16.mxu1 %v661_v0 }
  0x48   :  { %499 = vmatpush3.bf16.msra.mxu0 %v561_v7  ;;  %519 = vmatpush3.bf16.msra.mxu1 %v570_v14 }
  0x49   :  { %500 = vmatprep.subr.bf16.mxu0 %v661_v0  ;;  %520 = vmatprep.subr.bf16.mxu1 %v661_v0 }
  0x4c   :  { %501 = vmatpush3.bf16.msra.mxu0 %v562_v8  ;;  %521 = vmatpush3.bf16.msra.mxu1 %v571_v15 }
  0x4d   :  { %502 = vmatprep.subr.bf16.mxu0 %v661_v0  ;;  %522 = vmatprep.subr.bf16.mxu1 %v661_v0 }
  0x50   :  { %503 = vmatpush3.bf16.msra.mxu0 %v563_v9  ;;  %523 = vmatpush3.bf16.msra.mxu1 %v572_v16 }
  0x51   :  { %504 = vmatprep.subr.bf16.mxu0 %v661_v0  ;;  %524 = vmatprep.subr.bf16.mxu1 %v661_v0 }
  0x54   :  { %505 = vmatpush3.bf16.msra.mxu0 %v564_v10  ;;  %525 = vmatpush3.bf16.msra.mxu1 %v573_v17 }
  0x55   :  { %530 = vmatprep.subr.bf16.mxu0 %v661_v0 }
  0x57   :  { %507 = vmatmul.mubr.bf16.vlgmr.msra.gmra.mrb[0].mxu0 %v565_v11 }
  0x58   :  { %546 = vmatprep.mubr.msk.bf16.mxu0 %vm662_vm0, %v661_v0  ;;  %531 = vmatpush3.bf16.msra.mxu0 %v574_v18 }
  0x59   :  { %532 = vmatprep.subr.bf16.mxu0 %v661_v0 }
  0x5c   :  { %533 = vmatpush3.bf16.msra.mxu0 %v575_v19 }
  0x5d   :  { %534 = vmatprep.subr.bf16.mxu0 %v661_v0 }
  0x60   :  { %535 = vmatpush3.bf16.msra.mxu0 %v576_v33 }
  0x61   :  { %536 = vmatprep.subr.bf16.mxu0 %v661_v0 }
  0x64   :  { %537 = vmatpush3.bf16.msra.mxu0 %v577_v34 }
  0x65   :  { %538 = vmatprep.subr.bf16.mxu0 %v661_v0 }
  0x68   :  { %539 = vmatpush3.bf16.msra.mxu0 %v578_v35 }
  0x69   :  { %540 = vmatprep.subr.bf16.mxu0 %v661_v0 }
  0x6c   :  { %541 = vmatpush3.bf16.msra.mxu0 %v579_v36 }
  0x6d   :  { %542 = vmatprep.subr.bf16.mxu0 %v661_v0 }
  0x70   :  { %543 = vmatpush3.bf16.msra.mxu0 %v580_v37 }
  0x71   :  { %544 = vmatprep.subr.bf16.mxu0 %v661_v0 }
  0x74   :  { %545 = vmatpush3.bf16.msra.mxu0 %v581_v38 }
 0x12a   :  { %v184_v21 = vpop.f32.mrb[0].mxu0 }
 0x12b   :  { %v508_v22 = vpop.f32.mrb[1].mxu0  ;;  %v185_v24 = vadd.f32 %v435_v20, %v184_v21 }
 0x12c   :  { %v187_v23 = vpop.f32.mrb[2].mxu0 }
 0x12d   :  { %v188_v25 = vadd.f32 %v435_v20, %v187_v23  ;;  %v509_v26 = vpop.f32.mrb[3].mxu0 }
 0x12f   :  { %v191_v27 = vpack.c.bf16 %v188_v25, %v185_v24 }
 0x131   :  { %v193_v28 = vmul.bf16 1060454197, %v191_v27  ;;  %v192_v30 = vmul.bf16 1056980736, %v191_v27 }
 0x133   :  { %582 = verf.bf16 %v193_v28 }
 0x13e   :  { %v583_v29 = vpop.eup %582 }
 0x13f   :  { %v195_v31 = vadd.bf16 1065369472, %v583_v29 }
 0x141   :  { %v196_v32 = vmul.bf16 %v195_v31, %v192_v30 }
 0x143   :  { %527 = vmatmul.mubr.bf16.vlgmr.msra.gmra.mrb[0].mxu1 %v196_v32 }
 0x216   :  { %v302_v40 = vpop.f32.mrb[0].mxu1 }
 0x217   :  { %v528_v41 = vpop.f32.mrb[1].mxu1  ;;  %v303_v43 = vadd.f32 %v445_v39, %v302_v40 }
 0x218   :  { %v305_v42 = vpop.f32.mrb[2].mxu1 }
 0x219   :  { %v306_v44 = vadd.f32 %v445_v39, %v305_v42  ;;  %v529_v45 = vpop.f32.mrb[3].mxu1 }
 0x21b   :  { %v309_v46 = vpack.c.bf16 %v306_v44, %v303_v43 }
 0x21d   :  { %v311_v47 = vmul.bf16 1060454197, %v309_v46  ;;  %v310_v49 = vmul.bf16 1056980736, %v309_v46 }
 0x21f   :  { %584 = verf.bf16 %v311_v47 }
 0x22a   :  { %v585_v48 = vpop.eup %584 }
 0x22b   :  { %v313_v50 = vadd.bf16 1065369472, %v585_v48 }
 0x22d   :  { %v314_v51 = vmul.bf16 %v313_v50, %v310_v49 }
 0x22f   :  { %547 = vmatmul.mubr.bf16.vlgmr.msra.gmra.mrb[4].mxu0 %v314_v51 }
 0x302   :  { %v420_v53 = vpop.f32.mrb[4].mxu0 }
 0x303   :  { %v421_v54 = vadd.f32 %v454_v52, %v420_v53  ;;  %v548_v55 = vpop.f32.mrb[5].mxu0 }
 0x304   :  { %v423_v56 = vpop.f32.mrb[6].mxu0 }
 0x305   :  { %427 = vst [vmem:[%s810_s7] sm:$0xff] %v421_v54  ;;  %v424_v57 = vadd.f32 %v454_v52, %v423_v56  ;;  %v549_v58 = vpop.f32.mrb[7].mxu0 }
 0x307   :  { %428 = vst [vmem:[%s810_s7 + $0x8] sm:$0xff] %v424_v57 }
 0x308   :  { %433 = vsyncpa [#allocation3], 1 }
 0x309   :  { %434 = vsyncpa [#allocation5], 1 }

// kernel: mlp_forward.1
= control target key start
LH: loop header
LB: loop body
LE: loop exit
PB: predicated region body
PF: predicated region fallthrough
CT: control target
= control target key end

     0   :  { %12 = vsyncpa [#allocation3], 0  ;;  %s803_s0 = inlined_call_operand.vmem [shape: bf16[16,128], index: 0, kind: input, shape index: {}]   ;;  %s804_s1 = inlined_call_operand.hbm [shape: bf16[128,128], index: 1, kind: input, shape index: {}]   ;;  %s805_s2 = inlined_call_operand.vmem [shape: f32[1,128], index: 2, kind: input, shape index: {}]   ;;  %s806_s3 = inlined_call_operand.hbm [shape: bf16[128,128], index: 3, kind: input, shape index: {}]   ;;  %s807_s4 = inlined_call_operand.vmem [shape: f32[1,128], index: 4, kind: input, shape index: {}]   ;;  %s808_s5 = inlined_call_operand.hbm [shape: bf16[128,128], index: 5, kind: input, shape index: {}]   ;;  %s809_s6 = inlined_call_operand.vmem [shape: f32[1,128], index: 6, kind: input, shape index: {}]   ;;  %s810_s7 = inlined_call_operand.vmem [shape: f32[16,128], index: 7, kind: output, shape index: {}]  }
   0x1   :  { %13 = vsyncpa [#allocation5], 0  ;;  %s656_s24 = smov [#allocation4]   ;;  %s657_s26 = smov [#allocation2]  }
   0x2   :  { %s35_s25 = sshll.u32 %s656_s24, 4  ;;  %s21_s27 = sshll.u32 %s657_s26, 4  ;;  %s36_s25 = int_to_ptr.vmem [resolvable:$true] %s35_s25  ;;  %s703_s27 = int_to_ptr.vmem [resolvable:$true] %s21_s27 }
   0x3   :  { %s586_s30 = scalar_lea.hbm %s806_s3, 1024 }
   0x4   :  { %p587_p0 = scmp.ne.s32.totalorder %s806_s3, %s586_s30  ;;  %p590_p1 = scmp.lt.u32.totalorder %s586_s30, %s806_s3 }
   0x6   :  { %p592_p2 = pnand %p590_p1, %p587_p0 }
   0x8   :  { %595 = shalt.err (!%p592_p2)
}
   0x9   :  { %s596_s12 = scalar_lea.vmem %s36_s25, 1024  ;;  %p601_p4 = scmp.lt.s32.totalorder %s36_s25, %s36_s25 }
   0xa   :  { %p597_p3 = scmp.ne.s32.totalorder %s36_s25, %s596_s12  ;;  %p602_p5 = scmp.lt.s32.totalorder %s596_s12, %s596_s12 }
   0xc   :  { %p603_p6 = por %p602_p5, %p601_p4 }
   0xe   :  { %p604_p7 = pnand %p603_p6, %p597_p3 }
  0x10   :  { %607 = shalt.err (!%p604_p7)
}
  0x11   :  { %s658_s13 = smov 64   ;;  %s659_s14 = smov 4  }
  0x12   :  { %41 = dma.hbm_to_vmem [thread:$0]  %s806_s3, 1024, %s36_s25, [#allocation5], %s658_s13, %s658_s13, %s659_s14  }
  0x13   :  { %s608_s19 = scalar_lea.hbm %s804_s1, 1024 }
  0x14   :  { %p609_p8 = scmp.ne.s32.totalorder %s804_s1, %s608_s19  ;;  %p612_p9 = scmp.lt.u32.totalorder %s608_s19, %s804_s1 }
  0x16   :  { %p614_p10 = pnand %p612_p9, %p609_p8 }
  0x18   :  { %617 = shalt.err (!%p614_p10)
}
  0x19   :  { %s618_s24 = scalar_lea.vmem %s703_s27, 1024  ;;  %p623_p12 = scmp.lt.s32.totalorder %s703_s27, %s703_s27 }
  0x1a   :  { %p619_p11 = scmp.ne.s32.totalorder %s703_s27, %s618_s24  ;;  %p624_p13 = scmp.lt.s32.totalorder %s618_s24, %s618_s24 }
  0x1c   :  { %p625_p0 = por %p624_p13, %p623_p12 }
  0x1e   :  { %p626_p1 = pnand %p625_p0, %p619_p11 }
  0x20   :  { %629 = shalt.err (!%p626_p1)
}
  0x21   :  { %27 = dma.hbm_to_vmem [thread:$0]  %s804_s1, 1024, %s703_s27, [#allocation3], %s658_s13, %s658_s13, %s659_s14  }
  0x22   :  { %s660_s26 = smov [#allocation6]   ;;  %s630_s8 = scalar_lea.hbm %s808_s5, 1024 }
  0x23   :  { %s49_s28 = sshll.u32 %s660_s26, 4  ;;  %p631_p2 = scmp.ne.s32.totalorder %s808_s5, %s630_s8  ;;  %s50_s28 = int_to_ptr.vmem [resolvable:$true] %s49_s28 }
  0x24   :  { %p634_p3 = scmp.lt.u32.totalorder %s630_s8, %s808_s5 }
  0x26   :  { %p636_p4 = pnand %p634_p3, %p631_p2 }
  0x28   :  { %639 = shalt.err (!%p636_p4)
}
  0x29   :  { %s640_s15 = scalar_lea.vmem %s50_s28, 1024  ;;  %p645_p6 = scmp.lt.s32.totalorder %s50_s28, %s50_s28 }
  0x2a   :  { %p641_p5 = scmp.ne.s32.totalorder %s50_s28, %s640_s15  ;;  %p646_p7 = scmp.lt.s32.totalorder %s640_s15, %s640_s15 }
  0x2c   :  { %p647_p8 = por %p646_p7, %p645_p6 }
  0x2e   :  { %p648_p9 = pnand %p647_p8, %p641_p5 }
  0x30   :  { %651 = shalt.err (!%p648_p9)
}
  0x31   :  { %55 = dma.hbm_to_vmem [thread:$0]  %s808_s5, 1024, %s50_s28, [#allocation5], %s658_s13, %s658_s13, %s659_s14  }
  0x32   :  { %652 = dma.done.wait [#allocation3], 1024  }
  0x33   :  { %653 = vsyncadd [#allocation3], 4294966272 }
  0x34   :  { %654 = dma.done.wait [#allocation5], 2048  }
  0x35   :  { %655 = vsyncadd [#allocation5], 4294965248  ;;  %v661_v0 = vmov 0.0   ;;  %vm662_vm0 = vmmov 0   ;;  %v557_v1 = vld [vmem:[#allocation2] sm:$0xff]   ;;  %v558_v2 = vld [vmem:[#allocation2 + $0x8] sm:$0xff]  }
  0x36   :  { %490 = vmatprep.subr.bf16.mxu0 %v661_v0  ;;  %506 = vmatprep.mubr.msk.bf16.mxu0 %vm662_vm0, %v661_v0  ;;  %v559_v3 = vld [vmem:[#allocation2 + $0x10] sm:$0xff]   ;;  %v566_v4 = vld [vmem:[#allocation4] sm:$0xff]   ;;  %v560_v5 = vld [vmem:[#allocation2 + $0x18] sm:$0xff]  }
  0x37   :  { %510 = vmatprep.subr.bf16.mxu1 %v661_v0  ;;  %526 = vmatprep.mubr.msk.bf16.mxu1 %vm662_vm0, %v661_v0  ;;  %v567_v6 = vld [vmem:[#allocation4 + $0x8] sm:$0xff]   ;;  %v561_v7 = vld [vmem:[#allocation2 + $0x20] sm:$0xff]   ;;  %v563_v9 = vld [vmem:[#allocation2 + $0x30] sm:$0xff]  }
  0x38   :  { %491 = vmatpush3.bf16.msra.mxu0 %v557_v1  ;;  %511 = vmatpush3.bf16.msra.mxu1 %v566_v4  ;;  %v562_v8 = vld [vmem:[#allocation2 + $0x28] sm:$0xff]   ;;  %v564_v10 = vld [vmem:[#allocation2 + $0x38] sm:$0xff]   ;;  %v565_v11 = vld [vmem:[%s803_s0] sm:$0xff]  }
  0x39   :  { %492 = vmatprep.subr.bf16.mxu0 %v661_v0  ;;  %512 = vmatprep.subr.bf16.mxu1 %v661_v0  ;;  %v568_v12 = vld [vmem:[#allocation4 + $0x10] sm:$0xff]   ;;  %v569_v13 = vld [vmem:[#allocation4 + $0x18] sm:$0xff]   ;;  %v570_v14 = vld [vmem:[#allocation4 + $0x20] sm:$0xff]  }
  0x3a   :  { %v571_v15 = vld [vmem:[#allocation4 + $0x28] sm:$0xff]   ;;  %v572_v16 = vld [vmem:[#allocation4 + $0x30] sm:$0xff]   ;;  %v573_v17 = vld [vmem:[#allocation4 + $0x38] sm:$0xff]  }
  0x3b   :  { %v574_v18 = vld [vmem:[#allocation6] sm:$0xff]   ;;  %v575_v19 = vld [vmem:[#allocation6 + $0x8] sm:$0xff]   ;;  %v576_v33 = vld [vmem:[#allocation6 + $0x10] sm:$0xff]  }
  0x3c   :  { %493 = vmatpush3.bf16.msra.mxu0 %v558_v2  ;;  %513 = vmatpush3.bf16.msra.mxu1 %v567_v6  ;;  %v435_v20 = vld [vmem:[%s805_s2] ss:$0 sm:$0xff]  ;;  %v577_v34 = vld [vmem:[#allocation6 + $0x18] sm:$0xff]   ;;  %v579_v36 = vld [vmem:[#allocation6 + $0x28] sm:$0xff]  }
  0x3d   :  { %494 = vmatprep.subr.bf16.mxu0 %v661_v0  ;;  %514 = vmatprep.subr.bf16.mxu1 %v661_v0  ;;  %v578_v35 = vld [vmem:[#allocation6 + $0x20] sm:$0xff]   ;;  %v580_v37 = vld [vmem:[#allocation6 + $0x30] sm:$0xff]   ;;  %v581_v38 = vld [vmem:[#allocation6 + $0x38] sm:$0xff]  }
  0x3e   :  { %v445_v39 = vld [vmem:[%s807_s4] ss:$0 sm:$0xff] }
  0x3f   :  { %v454_v52 = vld [vmem:[%s809_s6] ss:$0 sm:$0xff] }
  0x40   :  { %495 = vmatpush3.bf16.msra.mxu0 %v559_v3  ;;  %515 = vmatpush3.bf16.msra.mxu1 %v568_v12 }
  0x41   :  { %496 = vmatprep.subr.bf16.mxu0 %v661_v0  ;;  %516 = vmatprep.subr.bf16.mxu1 %v661_v0 }
  0x44   :  { %497 = vmatpush3.bf16.msra.mxu0 %v560_v5  ;;  %517 = vmatpush3.bf16.msra.mxu1 %v569_v13 }
  0x45   :  { %498 = vmatprep.subr.bf16.mxu0 %v661_v0  ;;  %518 = vmatprep.subr.bf16.mxu1 %v661_v0 }
  0x48   :  { %499 = vmatpush3.bf16.msra.mxu0 %v561_v7  ;;  %519 = vmatpush3.bf16.msra.mxu1 %v570_v14 }
  0x49   :  { %500 = vmatprep.subr.bf16.mxu0 %v661_v0  ;;  %520 = vmatprep.subr.bf16.mxu1 %v661_v0 }
  0x4c   :  { %501 = vmatpush3.bf16.msra.mxu0 %v562_v8  ;;  %521 = vmatpush3.bf16.msra.mxu1 %v571_v15 }
  0x4d   :  { %502 = vmatprep.subr.bf16.mxu0 %v661_v0  ;;  %522 = vmatprep.subr.bf16.mxu1 %v661_v0 }
  0x50   :  { %503 = vmatpush3.bf16.msra.mxu0 %v563_v9  ;;  %523 = vmatpush3.bf16.msra.mxu1 %v572_v16 }
  0x51   :  { %504 = vmatprep.subr.bf16.mxu0 %v661_v0  ;;  %524 = vmatprep.subr.bf16.mxu1 %v661_v0 }
  0x54   :  { %505 = vmatpush3.bf16.msra.mxu0 %v564_v10  ;;  %525 = vmatpush3.bf16.msra.mxu1 %v573_v17 }
  0x55   :  { %530 = vmatprep.subr.bf16.mxu0 %v661_v0 }
  0x57   :  { %507 = vmatmul.mubr.bf16.vlgmr.msra.gmra.mrb[0].mxu0 %v565_v11 }
  0x58   :  { %546 = vmatprep.mubr.msk.bf16.mxu0 %vm662_vm0, %v661_v0  ;;  %531 = vmatpush3.bf16.msra.mxu0 %v574_v18 }
  0x59   :  { %532 = vmatprep.subr.bf16.mxu0 %v661_v0 }
  0x5c   :  { %533 = vmatpush3.bf16.msra.mxu0 %v575_v19 }
  0x5d   :  { %534 = vmatprep.subr.bf16.mxu0 %v661_v0 }
  0x60   :  { %535 = vmatpush3.bf16.msra.mxu0 %v576_v33 }
  0x61   :  { %536 = vmatprep.subr.bf16.mxu0 %v661_v0 }
  0x64   :  { %537 = vmatpush3.bf16.msra.mxu0 %v577_v34 }
  0x65   :  { %538 = vmatprep.subr.bf16.mxu0 %v661_v0 }
  0x68   :  { %539 = vmatpush3.bf16.msra.mxu0 %v578_v35 }
  0x69   :  { %540 = vmatprep.subr.bf16.mxu0 %v661_v0 }
  0x6c   :  { %541 = vmatpush3.bf16.msra.mxu0 %v579_v36 }
  0x6d   :  { %542 = vmatprep.subr.bf16.mxu0 %v661_v0 }
  0x70   :  { %543 = vmatpush3.bf16.msra.mxu0 %v580_v37 }
  0x71   :  { %544 = vmatprep.subr.bf16.mxu0 %v661_v0 }
  0x74   :  { %545 = vmatpush3.bf16.msra.mxu0 %v581_v38 }
 0x12a   :  { %v184_v21 = vpop.f32.mrb[0].mxu0 }
 0x12b   :  { %v508_v22 = vpop.f32.mrb[1].mxu0  ;;  %v185_v24 = vadd.f32 %v435_v20, %v184_v21 }
 0x12c   :  { %v187_v23 = vpop.f32.mrb[2].mxu0 }
 0x12d   :  { %v188_v25 = vadd.f32 %v435_v20, %v187_v23  ;;  %v509_v26 = vpop.f32.mrb[3].mxu0 }
 0x12f   :  { %v191_v27 = vpack.c.bf16 %v188_v25, %v185_v24 }
 0x131   :  { %v193_v28 = vmul.bf16 1060454197, %v191_v27  ;;  %v192_v30 = vmul.bf16 1056980736, %v191_v27 }
 0x133   :  { %582 = verf.bf16 %v193_v28 }
 0x13e   :  { %v583_v29 = vpop.eup %582 }
 0x13f   :  { %v195_v31 = vadd.bf16 1065369472, %v583_v29 }
 0x141   :  { %v196_v32 = vmul.bf16 %v195_v31, %v192_v30 }
 0x143   :  { %527 = vmatmul.mubr.bf16.vlgmr.msra.gmra.mrb[0].mxu1 %v196_v32 }
 0x216   :  { %v302_v40 = vpop.f32.mrb[0].mxu1 }
 0x217   :  { %v528_v41 = vpop.f32.mrb[1].mxu1  ;;  %v303_v43 = vadd.f32 %v445_v39, %v302_v40 }
 0x218   :  { %v305_v42 = vpop.f32.mrb[2].mxu1 }
 0x219   :  { %v306_v44 = vadd.f32 %v445_v39, %v305_v42  ;;  %v529_v45 = vpop.f32.mrb[3].mxu1 }
 0x21b   :  { %v309_v46 = vpack.c.bf16 %v306_v44, %v303_v43 }
 0x21d   :  { %v311_v47 = vmul.bf16 1060454197, %v309_v46  ;;  %v310_v49 = vmul.bf16 1056980736, %v309_v46 }
 0x21f   :  { %584 = verf.bf16 %v311_v47 }
 0x22a   :  { %v585_v48 = vpop.eup %584 }
 0x22b   :  { %v313_v50 = vadd.bf16 1065369472, %v585_v48 }
 0x22d   :  { %v314_v51 = vmul.bf16 %v313_v50, %v310_v49 }
 0x22f   :  { %547 = vmatmul.mubr.bf16.vlgmr.msra.gmra.mrb[4].mxu0 %v314_v51 }
 0x302   :  { %v420_v53 = vpop.f32.mrb[4].mxu0 }
 0x303   :  { %v421_v54 = vadd.f32 %v454_v52, %v420_v53  ;;  %v548_v55 = vpop.f32.mrb[5].mxu0 }
 0x304   :  { %v423_v56 = vpop.f32.mrb[6].mxu0 }
 0x305   :  { %427 = vst [vmem:[%s810_s7] sm:$0xff] %v421_v54  ;;  %v424_v57 = vadd.f32 %v454_v52, %v423_v56  ;;  %v549_v58 = vpop.f32.mrb[7].mxu0 }
 0x307   :  { %428 = vst [vmem:[%s810_s7 + $0x8] sm:$0xff] %v424_v57 }
 0x308   :  { %433 = vsyncpa [#allocation3], 1 }
 0x309   :  { %434 = vsyncpa [#allocation5], 1 }

</bundles_post_ra>
